<compile_context>
chip_gen: v6e
topology: v6e:2x2x1
jax: 0.10.0
libtpu: 0.0.40
codegen_flags: <defaults>
</compile_context>

<pallas_src>
import functools

import jax
import jax.numpy as jnp
from jax.experimental import pallas as pl
from jax.experimental.pallas import tpu as pltpu


def _round_up(x, m):
    return (x + m - 1) // m * m


def _recon_kernel(x_ref, w1_ref, b1_ref, w2_ref, b2_ref, o_ref):
    """Fused out = relu(x @ W1 + b1) @ W2 + b2 for one row-tile of x.

    Matmul operands are bf16 (MXU-native on v5e/v6e/v7x) with f32 accumulation;
    bias add and relu run in f32 on the VPU.
    """
    x = x_ref[...].astype(w1_ref.dtype)
    h = jnp.dot(x, w1_ref[...], preferred_element_type=jnp.float32)
    h = jnp.maximum(h + b1_ref[...], 0.0)          # activation = relu (f32)
    y = jnp.dot(h.astype(w2_ref.dtype), w2_ref[...],
                preferred_element_type=jnp.float32)
    o_ref[...] = (y + b2_ref[...]).astype(o_ref.dtype)


def _recon_pallas(feats, w1p, b1p, w2p, b2p, tile_n):
    """feats: (N, in_dim); w1p: (in, hid_pad) bf16; b1p: (1, hid_pad) f32;
    w2p: (hid_pad, org_dim) bf16; b2p: (1, org_dim) f32. Returns (N, org_dim)."""
    n, in_dim = feats.shape
    hid_pad = w1p.shape[1]
    org_dim = w2p.shape[1]
    grid = (pl.cdiv(n, tile_n),)

    # Explicit VMEM budget: double-buffered x/out tiles + (constant-index, but
    # still double-buffered) bf16 weights + f32 biases + f32/bf16 intermediates,
    # with 2x slack. Capped at 48 MiB so Mosaic scratch has headroom on v7x's
    # 64 MiB physical VMEM.
    itemsize = jnp.dtype(feats.dtype).itemsize
    vmem_bytes = (
        2 * tile_n * in_dim * itemsize                        # x tiles
        + 2 * tile_n * org_dim * itemsize                     # out tiles
        + 2 * (in_dim * hid_pad + hid_pad * org_dim) * 2      # bf16 weights
        + 2 * (hid_pad + org_dim) * 4                         # biases
        + tile_n * hid_pad * (4 + 2)                          # h (f32 + bf16 copy)
        + tile_n * in_dim * 2                                 # bf16 copy of x
    )
    vmem_limit = int(min(max(2 * vmem_bytes, 4 << 20), 48 << 20))

    return pl.pallas_call(
        _recon_kernel,
        out_shape=jax.ShapeDtypeStruct((n, org_dim), feats.dtype),
        grid_spec=pltpu.PrefetchScalarGridSpec(
            num_scalar_prefetch=0,
            grid=grid,
            in_specs=[
                pl.BlockSpec((tile_n, in_dim), lambda i: (i, 0)),
                pl.BlockSpec((in_dim, hid_pad), lambda i: (0, 0)),
                pl.BlockSpec((1, hid_pad), lambda i: (0, 0)),
                pl.BlockSpec((hid_pad, org_dim), lambda i: (0, 0)),
                pl.BlockSpec((1, org_dim), lambda i: (0, 0)),
            ],
            out_specs=pl.BlockSpec((tile_n, org_dim), lambda i: (i, 0)),
        ),
        compiler_params=pltpu.CompilerParams(
            dimension_semantics=("parallel",),   # row tiles shard across TCs
            vmem_limit_bytes=vmem_limit,
        ),
    )(feats, w1p, b1p, w2p, b2p)


def prepare_params(params):
    """One-time param prep (call once, outside the jitted forward):
    pad the hidden dim to a lane-dense multiple of 128, cast weights to bf16.
    Zero-padded hidden columns (and zero hidden bias padding) give exactly-zero
    hidden activations, so results are unchanged."""
    in_dim, hid_dim = params["w1"].shape
    org_dim = params["w2"].shape[1]
    hid_pad = _round_up(hid_dim, 128)
    w1p = jnp.zeros((in_dim, hid_pad), jnp.bfloat16).at[:, :hid_dim].set(
        params["w1"].astype(jnp.bfloat16))
    b1p = jnp.zeros((1, hid_pad), jnp.float32).at[:, :hid_dim].set(
        params["b1"].astype(jnp.float32))
    w2p = jnp.zeros((hid_pad, org_dim), jnp.bfloat16).at[:hid_dim, :].set(
        params["w2"].astype(jnp.bfloat16))
    b2p = params["b2"].astype(jnp.float32).reshape(1, org_dim)
    return {"w1p": w1p, "b1p": b1p, "w2p": w2p, "b2p": b2p}


@functools.partial(jax.jit, static_argnames=("tile_n_max",))
def reconstruction_forward(ufeats, ifeats, prepared, tile_n_max=512):
    """Mirrors ReconstructionLayer.forward (concat -> W1 -> relu -> W2 -> split)
    without materializing the concat: the fused kernel runs once per input.
    `prepared` comes from prepare_params() (done once, not per call).
    feats may be f32 or bf16 (bf16 halves the x-read HBM bytes)."""
    outs = []
    for feats in (ufeats, ifeats):
        n = feats.shape[0]
        # Big row tiles amortize per-grid-step overhead; for n in
        # (tile_n_max, 2*tile_n_max] shrink the tile so grid length >= 2
        # (both v7x TensorCores get work).
        tile_n = min(_round_up(n, 8), tile_n_max)
        if n > tile_n:
            tile_n = min(tile_n, _round_up(pl.cdiv(n, 2), 8))
        outs.append(_recon_pallas(feats, prepared["w1p"], prepared["b1p"],
                                  prepared["w2p"], prepared["b2p"], tile_n))
    return outs[0], outs[1]


def init_params(key, in_feats_dim, hidden_feats_dim, org_feats_dim):
    """Xavier-normal weights (as in reset_parameters); PyTorch-default-like
    uniform biases. Weights stored pre-transposed as (in, out)."""
    k1, k2, k3, k4 = jax.random.split(key, 4)
    std1 = (2.0 / (in_feats_dim + hidden_feats_dim)) ** 0.5
    std2 = (2.0 / (hidden_feats_dim + org_feats_dim)) ** 0.5
    w1 = std1 * jax.random.normal(k1, (in_feats_dim, hidden_feats_dim), jnp.float32)
    w2 = std2 * jax.random.normal(k2, (hidden_feats_dim, org_feats_dim), jnp.float32)
    bound1 = 1.0 / (in_feats_dim ** 0.5)
    bound2 = 1.0 / (hidden_feats_dim ** 0.5)
    b1 = jax.random.uniform(k3, (1, hidden_feats_dim), jnp.float32, -bound1, bound1)
    b2 = jax.random.uniform(k4, (1, org_feats_dim), jnp.float32, -bound2, bound2)
    return {"w1": w1, "b1": b1, "w2": w2, "b2": b2}


if __name__ == "__main__":
    # Small, module-consistent shapes.
    in_feats_dim = 32      # encoder / previous decoder output dim
    hidden_feats_dim = 64
    org_feats_dim = 16     # original (encoder input) feature dim
    n_users, n_items = 8, 8

    key = jax.random.PRNGKey(0)
    kp, ku, ki = jax.random.split(key, 3)
    params = init_params(kp, in_feats_dim, hidden_feats_dim, org_feats_dim)
    prepared = prepare_params(params)          # one-time prep, outside forward
    ufeats = jax.random.normal(ku, (n_users, in_feats_dim), jnp.float32)
    ifeats = jax.random.normal(ki, (n_items, in_feats_dim), jnp.float32)

    u_out, i_out = reconstruction_forward(ufeats, ifeats, prepared)
    jax.block_until_ready((u_out, i_out))

    # Pure-JAX f32 reference check (kernel uses bf16 MXU operands with f32
    # accumulation, so tolerances are bf16-level).
    feats = jnp.concatenate([ufeats, ifeats], axis=0)
    ref = jnp.maximum(feats @ params["w1"] + params["b1"], 0.0) @ params["w2"] + params["b2"]
    got = jnp.concatenate([u_out, i_out], axis=0)
    assert u_out.shape == (n_users, org_feats_dim)
    assert i_out.shape == (n_items, org_feats_dim)
    assert jnp.allclose(got, ref, atol=5e-2, rtol=5e-2), float(jnp.abs(got - ref).max())

    print("KERNEL_OK")
</pallas_src>

<mosaic_0001>
module attributes {stable_mosaic.version = 11 : i64} {
  func.func @_recon_kernel(%arg0: i32, %arg1: memref<8x32xf32, #tpu.memory_space<vmem>>, %arg2: memref<32x128xbf16, #tpu.memory_space<vmem>>, %arg3: memref<1x128xf32, #tpu.memory_space<vmem>>, %arg4: memref<128x16xbf16, #tpu.memory_space<vmem>>, %arg5: memref<1x16xf32, #tpu.memory_space<vmem>>, %arg6: memref<8x16xf32, #tpu.memory_space<vmem>>) attributes {dimension_semantics = [#tpu.dimension_semantics<parallel>], iteration_bounds = array<i64: 1>, scalar_prefetch = 0 : i64, scratch_operands = 0 : i64, tpu.core_type = #tpu.core_type<tc>, window_params = [{transform_indices = @transform_0, window_bounds = array<i64: 8, 32>}, {pipeline_mode = #tpu.pipeline_mode<synchronous>, transform_indices = @transform_1, window_bounds = array<i64: 32, 128>}, {pipeline_mode = #tpu.pipeline_mode<synchronous>, transform_indices = @transform_2, window_bounds = array<i64: 1, 128>}, {pipeline_mode = #tpu.pipeline_mode<synchronous>, transform_indices = @transform_3, window_bounds = array<i64: 128, 16>}, {pipeline_mode = #tpu.pipeline_mode<synchronous>, transform_indices = @transform_4, window_bounds = array<i64: 1, 16>}, {transform_indices = @transform_5, window_bounds = array<i64: 8, 16>}]} {
    %c0 = arith.constant 0 : index
    %c0_0 = arith.constant 0 : index
    %0 = vector.load %arg1[%c0, %c0_0] : memref<8x32xf32, #tpu.memory_space<vmem>>, vector<8x32xf32>
    %1 = arith.truncf %0 : vector<8x32xf32> to vector<8x32xbf16>
    %c0_1 = arith.constant 0 : index
    %c0_2 = arith.constant 0 : index
    %2 = vector.load %arg2[%c0_1, %c0_2] : memref<32x128xbf16, #tpu.memory_space<vmem>>, vector<32x128xbf16>
    %cst = arith.constant dense<0.000000e+00> : vector<8x128xf32>
    %3 = tpu.matmul %1, %2, %cst {dimension_numbers = #tpu.dot_dimension_numbers<[1], [0], [0], [1], [0, 0, 1, 1], [], []>} : vector<8x32xbf16>, vector<32x128xbf16>, vector<8x128xf32> -> vector<8x128xf32>
    %c0_3 = arith.constant 0 : index
    %c0_4 = arith.constant 0 : index
    %4 = vector.load %arg3[%c0_3, %c0_4] : memref<1x128xf32, #tpu.memory_space<vmem>>, vector<1x128xf32>
    %5 = vector.broadcast %4 : vector<1x128xf32> to vector<8x128xf32>
    %6 = arith.addf %3, %5 : vector<8x128xf32>
    %cst_5 = arith.constant 0.000000e+00 : f32
    %7 = vector.broadcast %cst_5 : f32 to vector<8x128xf32>
    %8 = arith.maximumf %6, %7 : vector<8x128xf32>
    %9 = arith.truncf %8 : vector<8x128xf32> to vector<8x128xbf16>
    %c0_6 = arith.constant 0 : index
    %c0_7 = arith.constant 0 : index
    %10 = vector.load %arg4[%c0_6, %c0_7] : memref<128x16xbf16, #tpu.memory_space<vmem>>, vector<128x16xbf16>
    %cst_8 = arith.constant dense<0.000000e+00> : vector<8x16xf32>
    %11 = tpu.matmul %9, %10, %cst_8 {dimension_numbers = #tpu.dot_dimension_numbers<[1], [0], [0], [1], [0, 0, 1, 1], [], []>} : vector<8x128xbf16>, vector<128x16xbf16>, vector<8x16xf32> -> vector<8x16xf32>
    %c0_9 = arith.constant 0 : index
    %c0_10 = arith.constant 0 : index
    %12 = vector.load %arg5[%c0_9, %c0_10] : memref<1x16xf32, #tpu.memory_space<vmem>>, vector<1x16xf32>
    %13 = vector.broadcast %12 : vector<1x16xf32> to vector<8x16xf32>
    %14 = arith.addf %11, %13 : vector<8x16xf32>
    %c0_11 = arith.constant 0 : index
    %c0_12 = arith.constant 0 : index
    %15 = vector.load %arg6[%c0_11, %c0_12] : memref<8x16xf32, #tpu.memory_space<vmem>>, vector<8x16xf32>
    tpu.vector_store %arg6[%c0_11, %c0_12], %14 {strides = array<i32>} : memref<8x16xf32, #tpu.memory_space<vmem>>, vector<8x16xf32>,
    return
  }
  func.func @transform_0(%arg0: i32) -> (i32, i32) {
    %c0_i32 = arith.constant 0 : i32
    %c0_i32_0 = arith.constant 0 : i32
    return %arg0, %c0_i32 : i32, i32
  }
  func.func @transform_1(%arg0: i32) -> (i32, i32) {
    %c0_i32 = arith.constant 0 : i32
    %c0_i32_0 = arith.constant 0 : i32
    %c0_i32_1 = arith.constant 0 : i32
    return %c0_i32, %c0_i32_0 : i32, i32
  }
  func.func @transform_2(%arg0: i32) -> (i32, i32) {
    %c0_i32 = arith.constant 0 : i32
    %c0_i32_0 = arith.constant 0 : i32
    %c0_i32_1 = arith.constant 0 : i32
    return %c0_i32, %c0_i32_0 : i32, i32
  }
  func.func @transform_3(%arg0: i32) -> (i32, i32) {
    %c0_i32 = arith.constant 0 : i32
    %c0_i32_0 = arith.constant 0 : i32
    %c0_i32_1 = arith.constant 0 : i32
    return %c0_i32, %c0_i32_0 : i32, i32
  }
  func.func @transform_4(%arg0: i32) -> (i32, i32) {
    %c0_i32 = arith.constant 0 : i32
    %c0_i32_0 = arith.constant 0 : i32
    %c0_i32_1 = arith.constant 0 : i32
    return %c0_i32, %c0_i32_0 : i32, i32
  }
  func.func @transform_5(%arg0: i32) -> (i32, i32) {
    %c0_i32 = arith.constant 0 : i32
    %c0_i32_0 = arith.constant 0 : i32
    return %arg0, %c0_i32 : i32, i32
  }
}

</mosaic_0001>

<bundles_post_ra>
// kernel: reconstruction_forward.3
= control target key start
LH: loop header
LB: loop body
LE: loop exit
PB: predicated region body
PF: predicated region fallthrough
CT: control target
= control target key end

     0   :  { %v308_v1 = vmov 0.0   ;;  %vm309_vm0 = vmmov 0   ;;  %vm47_vm1 = vcmask 261120   ;;  %s383_s0 = inlined_call_operand.vmem [shape: f32[8,32], index: 0, kind: input, shape index: {}]   ;;  %s384_s1 = inlined_call_operand.vmem [shape: bf16[32,128], index: 1, kind: input, shape index: {}]   ;;  %s385_s2 = inlined_call_operand.vmem [shape: f32[1,128], index: 2, kind: input, shape index: {}]   ;;  %s386_s3 = inlined_call_operand.vmem [shape: bf16[128,16], index: 3, kind: input, shape index: {}]   ;;  %s387_s4 = inlined_call_operand.vmem [shape: f32[1,16], index: 4, kind: input, shape index: {}]   ;;  %s388_s5 = inlined_call_operand.hbm [shape: f32[8,16], index: 5, kind: output, shape index: {}]  }
   0x1   :  { %v276_v0 = vld [vmem:[%s384_s1 + $0x8] sm:$0xff]   ;;  %245 = vmatprep.subr.bf16.mxu0 %v308_v1  ;;  %v277_v2 = vld [vmem:[%s384_s1] sm:$0xff]   ;;  %253 = vmatprep.subr.bf16.mxu1 %v308_v1  ;;  %v278_v4 = vld [vmem:[%s386_s3 + $0x38] sm:$0xff]  }
   0x2   :  { %246 = vmatpush3.bf16.msra.mxu0 %v276_v0  ;;  %249 = vmatprep.mubr.msk.bf16.mxu0 %vm309_vm0, %v308_v1  ;;  %v22_v3 = vld [vmem:[%s383_s0] sm:$0xff]  ;;  %v279_v6 = vld [vmem:[%s386_s3 + $0x30] sm:$0xff]   ;;  %v280_v7 = vld [vmem:[%s386_s3 + $0x28] sm:$0xff]  }
   0x3   :  { %247 = vmatprep.subr.bf16.mxu0 %v308_v1  ;;  %269 = vmatprep.mubr.msk.bf16.mxu1 %vm309_vm0, %v308_v1  ;;  %v23_v5 = vpack.c.bf16 %v22_v3, %v22_v3 }
   0x4   :  { %254 = vmatpush3.bf16.msra.mxu1 %v278_v4 }
   0x5   :  { %255 = vmatprep.subr.bf16.mxu1 %v308_v1 }
   0x6   :  { %248 = vmatpush3.bf16.msra.mxu0 %v277_v2 }
   0x8   :  { %256 = vmatpush3.bf16.msra.mxu1 %v279_v6 }
   0x9   :  { %250 = vmatmul.mubr.msk.bf16.vlgmr.msra.gmra.mxu0 %vm47_vm1, %v23_v5  ;;  %257 = vmatprep.subr.bf16.mxu1 %v308_v1 }
   0xa   :  { %10 = vsyncpa [#allocation3], 0  ;;  %v281_v8 = vld [vmem:[%s386_s3 + $0x20] sm:$0xff]   ;;  %v282_v9 = vld [vmem:[%s386_s3 + $0x18] sm:$0xff]   ;;  %s310_s17 = smov [#allocation2]   ;;  %vm204_vm2 = vcmask 130048  }
   0xb   :  { %v283_v10 = vld [vmem:[%s386_s3 + $0x10] sm:$0xff]   ;;  %v284_v11 = vld [vmem:[%s386_s3 + $0x8] sm:$0xff]   ;;  %v285_v12 = vld [vmem:[%s386_s3] sm:$0xff]   ;;  %s212_s18 = sshll.u32 %s310_s17, 4  ;;  %s213_s18 = int_to_ptr.vmem [resolvable:$true] %s212_s18 }
   0xc   :  { %258 = vmatpush3.bf16.msra.mxu1 %v280_v7  ;;  %v220_v13 = vld [vmem:[%s385_s2] ss:$0 sm:$0xff]  ;;  %s286_s2 = scalar_lea.vmem %s213_s18, 128  ;;  %p291_p1 = scmp.lt.s32.totalorder %s213_s18, %s213_s18 }
   0xd   :  { %259 = vmatprep.subr.bf16.mxu1 %v308_v1  ;;  %v224_v21 = vld [vmem:[%s387_s4] ss:$0 sm:$0xff]  ;;  %p287_p0 = scmp.ne.s32.totalorder %s213_s18, %s286_s2  ;;  %p292_p2 = scmp.lt.s32.totalorder %s286_s2, %s286_s2 }
   0xf   :  { %p293_p3 = por %p292_p2, %p291_p1 }
  0x10   :  { %260 = vmatpush3.bf16.msra.mxu1 %v281_v8 }
  0x11   :  { %261 = vmatprep.subr.bf16.mxu1 %v308_v1  ;;  %p294_p4 = pnand %p293_p3, %p287_p0 }
  0x14   :  { %262 = vmatpush3.bf16.msra.mxu1 %v282_v9 }
  0x15   :  { %263 = vmatprep.subr.bf16.mxu1 %v308_v1 }
  0x18   :  { %264 = vmatpush3.bf16.msra.mxu1 %v283_v10 }
  0x19   :  { %265 = vmatprep.subr.bf16.mxu1 %v308_v1 }
  0x1c   :  { %266 = vmatpush3.bf16.msra.mxu1 %v284_v11 }
  0x1d   :  { %267 = vmatprep.subr.bf16.mxu1 %v308_v1 }
  0x20   :  { %268 = vmatpush3.bf16.msra.mxu1 %v285_v12 }
  0xc9   :  { %v85_v14 = vpop.f32.mrf.mxu0 }
  0xca   :  { %v86_v15 = vadd.f32 %v220_v13, %v85_v14 }
  0xcb   :  { %v251_v16 = vpop.f32.mrf.mxu0 }
  0xcc   :  { %v91_v17 = vmax.f32 %v86_v15, 0.0 }
  0xcd   :  { %v88_v18 = vpop.f32.mrf.mxu0 }
  0xce   :  { %v92_v19 = vpack.c.bf16 %v91_v17, %v91_v17 }
  0xcf   :  { %v252_v20 = vpop.f32.mrf.mxu0 }
  0xd0   :  { %270 = vmatmul.mubr.bf16.vlgmr.msra.gmra.mxu1 %v92_v19 }
 0x190   :  { %v198_v22 = vpop.f32.mrf.mxu1 }
 0x191   :  { %v199_v23 = vadd.f32 %v224_v21, %v198_v22 }
 0x192   :  { %v271_v24 = vpop.f32.mrf.mxu1 }
 0x193   :  { %205 = vst.msk [vmem:[#allocation2] sm:$0xff] %vm204_vm2, %v199_v23 }
 0x194   :  { %v201_v25 = vpop.f32.mrf.mxu1 }
 0x195   :  { %297 = shalt.err (!%p294_p4)
}
 0x196   :  { %215 = dma.vmem_to_hbm [thread:$0]  %s213_s18, 128, %s388_s5, [#allocation3]   ;;  %v272_v26 = vpop.f32.mrf.mxu1 }
 0x197   :  { %306 = dma.done.wait [#allocation3], 128  }
 0x198   :  { %307 = vsyncadd [#allocation3], 4294967168 }
 0x199   :  { %219 = vsyncpa [#allocation3], 1 }

</bundles_post_ra>
